<compile_context>
chip_gen: v7x
topology: tpu7x:2x2x1
jax: 0.10.0
libtpu: 0.0.40
codegen_flags: <defaults>
</compile_context>

<pallas_src>
import jax
import jax.numpy as jnp
from jax.experimental import pallas as pl
from jax.experimental.pallas import tpu as pltpu


def _round_up(x, m):
    return ((x + m - 1) // m) * m


# ----------------------------------------------------------------------------
# Fused kernel: per-point MLP -> running max-pool -> MLP head
# Grid = (cloud index b [parallel], point tile j [arbitrary])
# ----------------------------------------------------------------------------
def _make_kernel(want_emb2):
    def kernel(x_ref, w1t_ref, b1t_ref, w2_ref, b2_ref,
               w3_ref, b3_ref, w4_ref, b4_ref, *refs):
        # x_ref:   (1, CIN, NT)  lane-dense point tile of one cloud (f32)
        # w1t/b1t: (H1P, CIN), (H1P, 1)  first per-point layer (VPU, f32)
        # w2/b2:   (H1P, H2),  (1, H2)   second per-point layer (MXU)
        # w3/b3:   (H2, HP),   (1, HP)   additional_layers (zero-padded lanes)
        # w4/b4:   (HP, HP),   (1, HP)   final_layer      (zero-padded lanes)
        # outputs: (1, 1, HP) logits [+ (1, 1, HP) emb2]
        # acc_ref: (1, H2) f32 scratch -- running max over point tiles
        if want_emb2:
            logits_ref, emb2_ref, acc_ref = refs
        else:
            logits_ref, acc_ref = refs
            emb2_ref = None

        j = pl.program_id(1)
        n_pt = pl.num_programs(1)

        @pl.when(j == 0)
        def _():
            acc_ref[...] = jnp.full(acc_ref.shape, -jnp.inf, acc_ref.dtype)

        x = x_ref[0]                                  # (CIN, NT) f32
        w1t = w1t_ref[...]                            # (H1P, CIN) f32
        cin = x.shape[0]

        # --- layer 1 (Cin=3): VPU broadcast FMAs, feature-major ---------------
        h1 = w1t[:, 0:1] * x[0:1, :]
        for c in range(1, cin):                       # cin is tiny & static
            h1 = h1 + w1t[:, c:c + 1] * x[c:c + 1, :]
        h1 = jnp.maximum(h1 + b1t_ref[...], 0.0)      # (H1P, NT) f32

        # --- single aligned transpose to row-major for MXU + pooling ----------
        h1r = jnp.transpose(h1)                       # (NT, H1P) f32  (XLU)

        # --- layer 2 (K = H1P = 128): MXU --------------------------------------
        h2 = jnp.dot(h1r.astype(w2_ref.dtype), w2_ref[...],
                     preferred_element_type=jnp.float32)
        h2 = jnp.maximum(h2 + b2_ref[...], 0.0)       # (NT, H2) f32

        # --- running max-pool over point tiles (sublane reduction) ------------
        part = jnp.max(h2, axis=0, keepdims=True)     # (1, H2)
        acc_ref[...] = jnp.maximum(acc_ref[...], part)

        # --- head on the last point tile of this cloud -------------------------
        @pl.when(j == n_pt - 1)
        def _():
            emb = acc_ref[...]                        # (1, H2) f32
            e2 = jnp.dot(emb.astype(w3_ref.dtype), w3_ref[...],
                         preferred_element_type=jnp.float32)
            e2 = jnp.maximum(e2 + b3_ref[...], 0.0)   # (1, HP) f32
            if emb2_ref is not None:
                emb2_ref[...] = e2.reshape(emb2_ref.shape)
            logits = jnp.dot(e2.astype(w4_ref.dtype), w4_ref[...],
                             preferred_element_type=jnp.float32) + b4_ref[...]
            logits_ref[...] = logits.reshape(logits_ref.shape)

    return kernel


# ----------------------------------------------------------------------------
# FineTuneModel.forward
# ----------------------------------------------------------------------------
def fine_tune_model_forward(params, inputs_ncl,
                            get_embeddings=True,
                            get_embeddings_additional_layer=False,
                            mxu_dtype=jnp.bfloat16,
                            point_tile=1024):
    """inputs_ncl: [B, CIN, N_points] (PyTorch Conv1d NCL convention)."""
    del get_embeddings  # the fused encoder always produces embeddings

    w1, b1 = params["w1"], params["b1"]
    w2, b2 = params["w2"], params["b2"]
    w3, b3 = params["w3"], params["b3"]
    w4, b4 = params["w4"], params["b4"]

    B, CIN, N = inputs_ncl.shape
    H1, H2 = w1.shape[1], w2.shape[1]
    H3, NCLS = w3.shape[1], w4.shape[1]
    H1P = _round_up(H1, 128)                       # MXU depth for layer 2
    HP = _round_up(max(H3, NCLS), 128)             # lane-dense head width

    # --- point tiling: NT multiple of 128, N padded (edge-replicated) ---------
    NT = min(_round_up(point_tile, 128), _round_up(N, 128))
    N_pad = _round_up(N, NT)
    B_pad = _round_up(B, 2)                        # even grid for v7x's 2 TCs

    x = inputs_ncl.astype(jnp.float32)             # native (B, CIN, N) layout
    if N_pad != N:
        # replicate the last point: max-pool invariant
        x = jnp.pad(x, ((0, 0), (0, 0), (0, N_pad - N)), mode="edge")
    if B_pad != B:
        x = jnp.pad(x, ((0, B_pad - B), (0, 0), (0, 0)))  # garbage rows sliced off

    f32 = jnp.float32
    # layer 1: transposed + zero-padded H1 -> H1P (feature-major VPU path, f32)
    w1t = jnp.zeros((H1P, CIN), f32).at[:H1, :].set(w1.T.astype(f32))
    b1t = jnp.zeros((H1P, 1), f32).at[:H1, 0].set(b1.reshape(-1).astype(f32))
    # layer 2: zero rows for the padded H1 features; MXU dtype
    w2p = jnp.zeros((H1P, H2), f32).at[:H1, :].set(w2.astype(f32)).astype(mxu_dtype)
    b2r = b2.reshape(1, H2).astype(f32)
    # head: zero-padded to HP lanes (exact: padded rows/cols contribute 0)
    w3p = jnp.zeros((H2, HP), f32).at[:, :H3].set(w3.astype(f32)).astype(mxu_dtype)
    b3r = jnp.zeros((1, HP), f32).at[:, :H3].set(b3.reshape(1, -1).astype(f32))
    w4p = jnp.zeros((HP, HP), f32).at[:H3, :NCLS].set(w4.astype(f32)).astype(mxu_dtype)
    b4r = jnp.zeros((1, HP), f32).at[:, :NCLS].set(b4.reshape(1, -1).astype(f32))

    want_emb2 = bool(get_embeddings_additional_layer)
    grid = (B_pad, N_pad // NT)

    if want_emb2:
        out_shape = (jax.ShapeDtypeStruct((B_pad, 1, HP), f32),
                     jax.ShapeDtypeStruct((B_pad, 1, HP), f32))
        out_specs = (pl.BlockSpec((1, 1, HP), lambda b, j: (b, 0, 0)),
                     pl.BlockSpec((1, 1, HP), lambda b, j: (b, 0, 0)))
    else:
        out_shape = jax.ShapeDtypeStruct((B_pad, 1, HP), f32)
        out_specs = pl.BlockSpec((1, 1, HP), lambda b, j: (b, 0, 0))

    result = pl.pallas_call(
        _make_kernel(want_emb2),
        out_shape=out_shape,
        grid_spec=pltpu.PrefetchScalarGridSpec(
            num_scalar_prefetch=0,
            grid=grid,
            in_specs=[
                pl.BlockSpec((1, CIN, NT), lambda b, j: (b, 0, j)),   # x tile
                pl.BlockSpec((H1P, CIN), lambda b, j: (0, 0)),        # w1t
                pl.BlockSpec((H1P, 1), lambda b, j: (0, 0)),          # b1t
                pl.BlockSpec((H1P, H2), lambda b, j: (0, 0)),         # w2
                pl.BlockSpec((1, H2), lambda b, j: (0, 0)),           # b2
                pl.BlockSpec((H2, HP), lambda b, j: (0, 0)),          # w3
                pl.BlockSpec((1, HP), lambda b, j: (0, 0)),           # b3
                pl.BlockSpec((HP, HP), lambda b, j: (0, 0)),          # w4
                pl.BlockSpec((1, HP), lambda b, j: (0, 0)),           # b4
            ],
            out_specs=out_specs,
            scratch_shapes=[pltpu.VMEM((1, H2), jnp.float32)],        # running max
        ),
        compiler_params=pltpu.CompilerParams(
            dimension_semantics=("parallel", "arbitrary")),
    )(x, w1t, b1t, w2p, b2r, w3p, b3r, w4p, b4r)

    if want_emb2:
        logits_pad, emb2_pad = result
        return logits_pad[:B, 0, :NCLS], emb2_pad[:B, 0, :H3]
    return result[:B, 0, :NCLS]


# ----------------------------------------------------------------------------
# Pure-JAX reference (for correctness check)
# ----------------------------------------------------------------------------
def reference_forward(params, inputs_ncl):
    x = jnp.transpose(inputs_ncl, (0, 2, 1)).astype(jnp.float32)
    h1 = jnp.maximum(x @ params["w1"] + params["b1"], 0.0)
    h2 = jnp.maximum(h1 @ params["w2"] + params["b2"], 0.0)
    emb = jnp.max(h2, axis=1)
    emb2 = jnp.maximum(emb @ params["w3"] + params["b3"], 0.0)
    logits = emb2 @ params["w4"] + params["b4"]
    return logits, emb2


if __name__ == "__main__":
    # Small deterministic shapes; B=16 with N=64 -> NT=128 (edge-padded), grid (16, 1).
    B, CIN, NPTS = 16, 3, 64
    H1, H2, H3, NCLS = 64, 128, 64, 10

    key = jax.random.PRNGKey(0)
    k = jax.random.split(key, 9)
    params = {
        "w1": jax.random.normal(k[0], (CIN, H1), jnp.float32) * 0.1,
        "b1": jax.random.normal(k[1], (1, H1), jnp.float32) * 0.01,
        "w2": jax.random.normal(k[2], (H1, H2), jnp.float32) * 0.1,
        "b2": jax.random.normal(k[3], (1, H2), jnp.float32) * 0.01,
        "w3": jax.random.normal(k[4], (H2, H3), jnp.float32) * 0.1,
        "b3": jax.random.normal(k[5], (1, H3), jnp.float32) * 0.01,
        "w4": jax.random.normal(k[6], (H3, NCLS), jnp.float32) * 0.1,
        "b4": jax.random.normal(k[7], (1, NCLS), jnp.float32) * 0.01,
    }
    inputs = jax.random.normal(k[8], (B, CIN, NPTS), jnp.float32)  # NCL like Conv1d

    with jax.default_matmul_precision("float32"):
        ref_logits, ref_emb2 = reference_forward(params, inputs)

    # Exact path (f32 MXU operands) + emb2 output: tight tolerance.
    out_f32, emb2_f32 = fine_tune_model_forward(
        params, inputs, get_embeddings_additional_layer=True,
        mxu_dtype=jnp.float32)
    out_f32 = jax.block_until_ready(out_f32)
    assert out_f32.shape == (B, NCLS)
    assert emb2_f32.shape == (B, H3)
    assert jnp.allclose(out_f32, ref_logits, atol=5e-3, rtol=5e-3), "f32 logits mismatch"
    assert jnp.allclose(emb2_f32, ref_emb2, atol=5e-3, rtol=5e-3), "f32 emb2 mismatch"

    # Default fast path (bf16 MXU operands, f32 accumulate, no emb2 output).
    out_bf16 = fine_tune_model_forward(params, inputs)
    out_bf16 = jax.block_until_ready(out_bf16)
    assert out_bf16.shape == (B, NCLS)
    assert jnp.allclose(out_bf16, ref_logits, atol=5e-2, rtol=5e-2), "bf16 logits mismatch"

    print("KERNEL_OK")
</pallas_src>

<mosaic_0001>
module attributes {stable_mosaic.version = 11 : i64} {
  func.func @kernel(%arg0: i32, %arg1: i32, %arg2: memref<1x3x128xf32, #tpu.memory_space<vmem>>, %arg3: memref<128x3xf32, #tpu.memory_space<vmem>>, %arg4: memref<128x1xf32, #tpu.memory_space<vmem>>, %arg5: memref<128x128xf32, #tpu.memory_space<vmem>>, %arg6: memref<1x128xf32, #tpu.memory_space<vmem>>, %arg7: memref<128x128xf32, #tpu.memory_space<vmem>>, %arg8: memref<1x128xf32, #tpu.memory_space<vmem>>, %arg9: memref<128x128xf32, #tpu.memory_space<vmem>>, %arg10: memref<1x128xf32, #tpu.memory_space<vmem>>, %arg11: memref<1x1x128xf32, #tpu.memory_space<vmem>>, %arg12: memref<1x1x128xf32, #tpu.memory_space<vmem>>, %arg13: memref<1x128xf32, #tpu.memory_space<vmem>>) attributes {dimension_semantics = [#tpu.dimension_semantics<parallel>, #tpu.dimension_semantics<arbitrary>], iteration_bounds = array<i64: 16, 1>, scalar_prefetch = 0 : i64, scratch_operands = 1 : i64, tpu.core_type = #tpu.core_type<tc>, window_params = [{transform_indices = @transform_0, window_bounds = array<i64: 1, 3, 128>}, {pipeline_mode = #tpu.pipeline_mode<synchronous>, transform_indices = @transform_1, window_bounds = array<i64: 128, 3>}, {pipeline_mode = #tpu.pipeline_mode<synchronous>, transform_indices = @transform_2, window_bounds = array<i64: 128, 1>}, {pipeline_mode = #tpu.pipeline_mode<synchronous>, transform_indices = @transform_3, window_bounds = array<i64: 128, 128>}, {pipeline_mode = #tpu.pipeline_mode<synchronous>, transform_indices = @transform_4, window_bounds = array<i64: 1, 128>}, {pipeline_mode = #tpu.pipeline_mode<synchronous>, transform_indices = @transform_5, window_bounds = array<i64: 128, 128>}, {pipeline_mode = #tpu.pipeline_mode<synchronous>, transform_indices = @transform_6, window_bounds = array<i64: 1, 128>}, {pipeline_mode = #tpu.pipeline_mode<synchronous>, transform_indices = @transform_7, window_bounds = array<i64: 128, 128>}, {pipeline_mode = #tpu.pipeline_mode<synchronous>, transform_indices = @transform_8, window_bounds = array<i64: 1, 128>}, {transform_indices = @transform_9, window_bounds = array<i64: 1, 1, 128>}, {transform_indices = @transform_10, window_bounds = array<i64: 1, 1, 128>}]} {
    %c0_i32 = arith.constant 0 : i32
    %0 = arith.cmpi eq, %arg1, %c0_i32 : i32
    %1 = arith.extui %0 : i1 to i32
    %c0_i32_0 = arith.constant 0 : i32
    %2 = arith.cmpi ne, %1, %c0_i32_0 : i32
    scf.if %2 {
      %cst_20 = arith.constant 0xFF800000 : f32
      %44 = vector.broadcast %cst_20 : f32 to vector<1x128xf32>
      %c0_21 = arith.constant 0 : index
      %c0_22 = arith.constant 0 : index
      %45 = vector.load %arg13[%c0_21, %c0_22] : memref<1x128xf32, #tpu.memory_space<vmem>>, vector<1x128xf32>
      tpu.vector_store %arg13[%c0_21, %c0_22], %44 {strides = array<i32>} : memref<1x128xf32, #tpu.memory_space<vmem>>, vector<1x128xf32>,
    } else {
    }
    %c0 = arith.constant 0 : index
    %c0_1 = arith.constant 0 : index
    %c0_2 = arith.constant 0 : index
    %3 = vector.load %arg2[%c0, %c0_1, %c0_2] : memref<1x3x128xf32, #tpu.memory_space<vmem>>, vector<1x3x128xf32>
    %4 = vector.shape_cast %3 : vector<1x3x128xf32> to vector<3x128xf32>
    %c0_3 = arith.constant 0 : index
    %c0_4 = arith.constant 0 : index
    %5 = vector.load %arg3[%c0_3, %c0_4] : memref<128x3xf32, #tpu.memory_space<vmem>>, vector<128x3xf32>
    %6 = vector.extract_strided_slice %5 {offsets = [0, 0], sizes = [128, 1], strides = [1, 1]} : vector<128x3xf32> to vector<128x1xf32>
    %7 = vector.extract_strided_slice %4 {offsets = [0, 0], sizes = [1, 128], strides = [1, 1]} : vector<3x128xf32> to vector<1x128xf32>
    %8 = vector.broadcast %6 : vector<128x1xf32> to vector<128x128xf32>
    %9 = vector.broadcast %7 : vector<1x128xf32> to vector<128x128xf32>
    %10 = arith.mulf %8, %9 : vector<128x128xf32>
    %11 = vector.extract_strided_slice %5 {offsets = [0, 1], sizes = [128, 1], strides = [1, 1]} : vector<128x3xf32> to vector<128x1xf32>
    %12 = vector.extract_strided_slice %4 {offsets = [1, 0], sizes = [1, 128], strides = [1, 1]} : vector<3x128xf32> to vector<1x128xf32>
    %13 = vector.broadcast %11 : vector<128x1xf32> to vector<128x128xf32>
    %14 = vector.broadcast %12 : vector<1x128xf32> to vector<128x128xf32>
    %15 = arith.mulf %13, %14 : vector<128x128xf32>
    %16 = arith.addf %10, %15 : vector<128x128xf32>
    %17 = vector.extract_strided_slice %5 {offsets = [0, 2], sizes = [128, 1], strides = [1, 1]} : vector<128x3xf32> to vector<128x1xf32>
    %18 = vector.extract_strided_slice %4 {offsets = [2, 0], sizes = [1, 128], strides = [1, 1]} : vector<3x128xf32> to vector<1x128xf32>
    %19 = vector.broadcast %17 : vector<128x1xf32> to vector<128x128xf32>
    %20 = vector.broadcast %18 : vector<1x128xf32> to vector<128x128xf32>
    %21 = arith.mulf %19, %20 : vector<128x128xf32>
    %22 = arith.addf %16, %21 : vector<128x128xf32>
    %c0_5 = arith.constant 0 : index
    %c0_6 = arith.constant 0 : index
    %23 = vector.load %arg4[%c0_5, %c0_6] : memref<128x1xf32, #tpu.memory_space<vmem>>, vector<128x1xf32>
    %24 = vector.broadcast %23 : vector<128x1xf32> to vector<128x128xf32>
    %25 = arith.addf %22, %24 : vector<128x128xf32>
    %cst = arith.constant 0.000000e+00 : f32
    %26 = vector.broadcast %cst : f32 to vector<128x128xf32>
    %27 = arith.maximumf %25, %26 : vector<128x128xf32>
    %28 = tpu.transpose %27, [1, 0] : vector<128x128xf32> -> vector<128x128xf32>
    %c0_7 = arith.constant 0 : index
    %c0_8 = arith.constant 0 : index
    %29 = vector.load %arg5[%c0_7, %c0_8] : memref<128x128xf32, #tpu.memory_space<vmem>>, vector<128x128xf32>
    %cst_9 = arith.constant dense<0.000000e+00> : vector<128x128xf32>
    %30 = tpu.matmul %28, %29, %cst_9 {dimension_numbers = #tpu.dot_dimension_numbers<[1], [0], [0], [1], [0, 0, 1, 1], [], []>} : vector<128x128xf32>, vector<128x128xf32>, vector<128x128xf32> -> vector<128x128xf32>
    %c0_10 = arith.constant 0 : index
    %c0_11 = arith.constant 0 : index
    %31 = vector.load %arg6[%c0_10, %c0_11] : memref<1x128xf32, #tpu.memory_space<vmem>>, vector<1x128xf32>
    %32 = vector.broadcast %31 : vector<1x128xf32> to vector<128x128xf32>
    %33 = arith.addf %30, %32 : vector<128x128xf32>
    %cst_12 = arith.constant 0.000000e+00 : f32
    %34 = vector.broadcast %cst_12 : f32 to vector<128x128xf32>
    %35 = arith.maximumf %33, %34 : vector<128x128xf32>
    %cst_13 = arith.constant dense<0xFF800000> : vector<128xf32>
    %36 = vector.multi_reduction <maximumf>, %35, %cst_13 [0] : vector<128x128xf32> to vector<128xf32>
    %37 = vector.shape_cast %36 : vector<128xf32> to vector<1x128xf32>
    %c0_14 = arith.constant 0 : index
    %c0_15 = arith.constant 0 : index
    %38 = vector.load %arg13[%c0_14, %c0_15] : memref<1x128xf32, #tpu.memory_space<vmem>>, vector<1x128xf32>
    %39 = arith.maximumf %38, %37 : vector<1x128xf32>
    %c0_16 = arith.constant 0 : index
    %c0_17 = arith.constant 0 : index
    %40 = vector.load %arg13[%c0_16, %c0_17] : memref<1x128xf32, #tpu.memory_space<vmem>>, vector<1x128xf32>
    tpu.vector_store %arg13[%c0_16, %c0_17], %39 {strides = array<i32>} : memref<1x128xf32, #tpu.memory_space<vmem>>, vector<1x128xf32>,
    %c0_i32_18 = arith.constant 0 : i32
    %41 = arith.cmpi eq, %arg1, %c0_i32_18 : i32
    %42 = arith.extui %41 : i1 to i32
    %c0_i32_19 = arith.constant 0 : i32
    %43 = arith.cmpi ne, %42, %c0_i32_19 : i32
    scf.if %43 {
      %c0_20 = arith.constant 0 : index
      %c0_21 = arith.constant 0 : index
      %44 = vector.load %arg13[%c0_20, %c0_21] : memref<1x128xf32, #tpu.memory_space<vmem>>, vector<1x128xf32>
      %c0_22 = arith.constant 0 : index
      %c0_23 = arith.constant 0 : index
      %45 = vector.load %arg7[%c0_22, %c0_23] : memref<128x128xf32, #tpu.memory_space<vmem>>, vector<128x128xf32>
      %cst_24 = arith.constant dense<0.000000e+00> : vector<1x128xf32>
      %46 = tpu.matmul %44, %45, %cst_24 {dimension_numbers = #tpu.dot_dimension_numbers<[1], [0], [0], [1], [0, 0, 1, 1], [], []>} : vector<1x128xf32>, vector<128x128xf32>, vector<1x128xf32> -> vector<1x128xf32>
      %c0_25 = arith.constant 0 : index
      %c0_26 = arith.constant 0 : index
      %47 = vector.load %arg8[%c0_25, %c0_26] : memref<1x128xf32, #tpu.memory_space<vmem>>, vector<1x128xf32>
      %48 = arith.addf %46, %47 : vector<1x128xf32>
      %cst_27 = arith.constant 0.000000e+00 : f32
      %49 = vector.broadcast %cst_27 : f32 to vector<1x128xf32>
      %50 = arith.maximumf %48, %49 : vector<1x128xf32>
      %51 = vector.shape_cast %50 : vector<1x128xf32> to vector<1x1x128xf32>
      %c0_28 = arith.constant 0 : index
      %c0_29 = arith.constant 0 : index
      %c0_30 = arith.constant 0 : index
      %52 = vector.load %arg12[%c0_28, %c0_29, %c0_30] : memref<1x1x128xf32, #tpu.memory_space<vmem>>, vector<1x1x128xf32>
      tpu.vector_store %arg12[%c0_28, %c0_29, %c0_30], %51 {strides = array<i32>} : memref<1x1x128xf32, #tpu.memory_space<vmem>>, vector<1x1x128xf32>,
      %c0_31 = arith.constant 0 : index
      %c0_32 = arith.constant 0 : index
      %53 = vector.load %arg9[%c0_31, %c0_32] : memref<128x128xf32, #tpu.memory_space<vmem>>, vector<128x128xf32>
      %cst_33 = arith.constant dense<0.000000e+00> : vector<1x128xf32>
      %54 = tpu.matmul %50, %53, %cst_33 {dimension_numbers = #tpu.dot_dimension_numbers<[1], [0], [0], [1], [0, 0, 1, 1], [], []>} : vector<1x128xf32>, vector<128x128xf32>, vector<1x128xf32> -> vector<1x128xf32>
      %c0_34 = arith.constant 0 : index
      %c0_35 = arith.constant 0 : index
      %55 = vector.load %arg10[%c0_34, %c0_35] : memref<1x128xf32, #tpu.memory_space<vmem>>, vector<1x128xf32>
      %56 = arith.addf %54, %55 : vector<1x128xf32>
      %57 = vector.shape_cast %56 : vector<1x128xf32> to vector<1x1x128xf32>
      %c0_36 = arith.constant 0 : index
      %c0_37 = arith.constant 0 : index
      %c0_38 = arith.constant 0 : index
      %58 = vector.load %arg11[%c0_36, %c0_37, %c0_38] : memref<1x1x128xf32, #tpu.memory_space<vmem>>, vector<1x1x128xf32>
      tpu.vector_store %arg11[%c0_36, %c0_37, %c0_38], %57 {strides = array<i32>} : memref<1x1x128xf32, #tpu.memory_space<vmem>>, vector<1x1x128xf32>,
    } else {
    }
    return
  }
  func.func @transform_0(%arg0: i32, %arg1: i32) -> (i32, i32, i32) {
    %c0_i32 = arith.constant 0 : i32
    %c0_i32_0 = arith.constant 0 : i32
    return %arg0, %c0_i32, %arg1 : i32, i32, i32
  }
  func.func @transform_1(%arg0: i32, %arg1: i32) -> (i32, i32) {
    %c0_i32 = arith.constant 0 : i32
    %c0_i32_0 = arith.constant 0 : i32
    %c0_i32_1 = arith.constant 0 : i32
    return %c0_i32, %c0_i32_0 : i32, i32
  }
  func.func @transform_2(%arg0: i32, %arg1: i32) -> (i32, i32) {
    %c0_i32 = arith.constant 0 : i32
    %c0_i32_0 = arith.constant 0 : i32
    %c0_i32_1 = arith.constant 0 : i32
    return %c0_i32, %c0_i32_0 : i32, i32
  }
  func.func @transform_3(%arg0: i32, %arg1: i32) -> (i32, i32) {
    %c0_i32 = arith.constant 0 : i32
    %c0_i32_0 = arith.constant 0 : i32
    %c0_i32_1 = arith.constant 0 : i32
    return %c0_i32, %c0_i32_0 : i32, i32
  }
  func.func @transform_4(%arg0: i32, %arg1: i32) -> (i32, i32) {
    %c0_i32 = arith.constant 0 : i32
    %c0_i32_0 = arith.constant 0 : i32
    %c0_i32_1 = arith.constant 0 : i32
    return %c0_i32, %c0_i32_0 : i32, i32
  }
  func.func @transform_5(%arg0: i32, %arg1: i32) -> (i32, i32) {
    %c0_i32 = arith.constant 0 : i32
    %c0_i32_0 = arith.constant 0 : i32
    %c0_i32_1 = arith.constant 0 : i32
    return %c0_i32, %c0_i32_0 : i32, i32
  }
  func.func @transform_6(%arg0: i32, %arg1: i32) -> (i32, i32) {
    %c0_i32 = arith.constant 0 : i32
    %c0_i32_0 = arith.constant 0 : i32
    %c0_i32_1 = arith.constant 0 : i32
    return %c0_i32, %c0_i32_0 : i32, i32
  }
  func.func @transform_7(%arg0: i32, %arg1: i32) -> (i32, i32) {
    %c0_i32 = arith.constant 0 : i32
    %c0_i32_0 = arith.constant 0 : i32
    %c0_i32_1 = arith.constant 0 : i32
    return %c0_i32, %c0_i32_0 : i32, i32
  }
  func.func @transform_8(%arg0: i32, %arg1: i32) -> (i32, i32) {
    %c0_i32 = arith.constant 0 : i32
    %c0_i32_0 = arith.constant 0 : i32
    %c0_i32_1 = arith.constant 0 : i32
    return %c0_i32, %c0_i32_0 : i32, i32
  }
  func.func @transform_9(%arg0: i32, %arg1: i32) -> (i32, i32, i32) {
    %c0_i32 = arith.constant 0 : i32
    %c0_i32_0 = arith.constant 0 : i32
    %c0_i32_1 = arith.constant 0 : i32
    return %arg0, %c0_i32, %c0_i32_0 : i32, i32, i32
  }
  func.func @transform_10(%arg0: i32, %arg1: i32) -> (i32, i32, i32) {
    %c0_i32 = arith.constant 0 : i32
    %c0_i32_0 = arith.constant 0 : i32
    %c0_i32_1 = arith.constant 0 : i32
    return %arg0, %c0_i32, %c0_i32_0 : i32, i32, i32
  }
}

</mosaic_0001>

<bundles_post_ra>
// kernel: tpu_custom_call.1
= control target key start
LH: loop header
LB: loop body
LE: loop exit
PB: predicated region body
PF: predicated region fallthrough
CT: control target
= control target key end

     0   :  { %s2560_s0 = inlined_call_operand.vmem [shape: f32[16,3,128], index: 0, kind: input, shape index: {}]   ;;  %s2561_s1 = inlined_call_operand.vmem [shape: f32[128,3], index: 1, kind: input, shape index: {}]   ;;  %s2562_s2 = inlined_call_operand.vmem [shape: f32[128,1], index: 2, kind: input, shape index: {}]   ;;  %s2563_s3 = inlined_call_operand.vmem [shape: f32[128,128], index: 3, kind: input, shape index: {}]   ;;  %s2564_s4 = inlined_call_operand.vmem [shape: f32[1,128], index: 4, kind: input, shape index: {}]   ;;  %s2565_s5 = inlined_call_operand.vmem [shape: f32[128,128], index: 5, kind: input, shape index: {}]   ;;  %s2566_s6 = inlined_call_operand.vmem [shape: f32[1,128], index: 6, kind: input, shape index: {}]   ;;  %s2567_s7 = inlined_call_operand.vmem [shape: f32[128,128], index: 7, kind: input, shape index: {}]   ;;  %s2568_s8 = inlined_call_operand.vmem [shape: f32[1,128], index: 8, kind: input, shape index: {}]   ;;  %s2569_s9 = inlined_call_operand.hbm [shape: f32[16,1,128], index: 9, kind: output, shape index: {0}]   ;;  %s2570_s10 = inlined_call_operand.hbm [shape: f32[16,1,128], index: 10, kind: output, shape index: {1}]  }
   0x1   :  { %2572 = sst [smem:[#allocation9_spill]] %s2560_s0 }
   0x2   :  { %2573 = sst [smem:[#allocation10_spill]] %s2561_s1 }
   0x3   :  { %16 = vsyncpa [#allocation4], 0 }
   0x4   :  { %18 = vsyncpa [#allocation4 + $0x1], 0 }
   0x5   :  { %19 = vsyncpa [#allocation6], 0 }
   0x6   :  { %21 = vsyncpa [#allocation6 + $0x1], 0  ;;  %s1948_s13 = smov 0   ;;  %s1950_s14 = smov 0  }
   0x7   :  { %s1952_s15 = smov 0   ;;  %s1954_s16 = smov 0  }
   0x8   :  { %s1956_s17 = smov 0   ;;  %s1958_s18 = smov 0  }
   0x9 LB: > { %s1382_s19 = sadd.s32 4294967295, %s1882_s18   ;;  %s1383_s20 = sadd.s32 4294967294, %s1882_s18   ;;  %s1882_s18 = sphi %s1958_s18, %s27_s18   ;;  %s1878_s17 = sphi %s1956_s17, %s2583_s17   ;;  %s1874_s16 = sphi %s1954_s16, %s2582_s16   ;;  %s1870_s15 = sphi %s1952_s15, %s2581_s15   ;;  %s1866_s14 = sphi %s1950_s14, %s2580_s14   ;;  %s1862_s13 = sphi %s1948_s13, %s2579_s13  }
   0xa   : > { %s39_s21 = sadd.s32 1, %s1878_s17  ;;  %s242_s22 = sadd.s32 1, %s1870_s15 }
   0xb   : > { %p41_p0 = scmp.ge.s32.totalorder %s39_s21, 16  ;;  %p252_p1 = scmp.ne.s32.totalorder %s1870_s15, %s1866_s14 }
   0xc   : > { %p253_p2 = scmp.eq.s32.totalorder %s1382_s19, 15  ;;  %p258_p3 = scmp.ne.s32.totalorder %s1866_s14, %s1862_s13 }
   0xd   : > { %s2585_s21 = smov (%p41_p0, %s39_s21), 0  ;;  %p259_p5 = scmp.eq.s32.totalorder %s1383_s20, 15 }
   0xe   : > { %p1988_p4 = por %p253_p2, %p252_p1  ;;  %s239_s24 = ssub.s32 %s1878_s17, %s2585_s21 }
   0xf   : > { %p1386_p6 = scmp.ge.s32.totalorder %s1882_s18, 1  ;;  %p240_p7 = scmp.eq.s32.totalorder %s239_s24, 0 }
  0x10   : > { %p1995_p8 = por %p259_p5, %p258_p3  ;;  %p337_p9 = scmp.lt.s32.totalorder %s1882_s18, 17 }
  0x11   : > { %s2001_s26 = scalar_select %p240_p7, %s1870_s15, %s242_s22  }
  0x12   : > { %p338_p10 = pnand %p1386_p6, %p337_p9 }
  0x13   : > { %s2576_s1 = sld [smem:[#allocation10_spill]] (!%p338_p10)  ;;  %v1884_v2 = vmov (!%p338_p10), 2   ;;  %v1885_v3 = vmov (!%p338_p10), 0   ;;  %v1886_v5 = vmov (!%p338_p10), 1   ;;  %v709_v13 = vld [vmem:[%s2562_s2] sm:$0xff] (!%p338_p10)  ;;  %v710_v14 = vld [vmem:[%s2562_s2 + $0x8] sm:$0xff] (!%p338_p10)  ;;  %v489_v61 = vlaneseq (!%p338_p10) }
  0x14   : > { %341 = sbr.rel (%p338_p10) target bundleno = 1168 (0x490), region = 56  ;;  %1738 = vset.pattern.permute.xlu0 (!%p338_p10), %v1884_v2  ;;  %1732 = vset.pattern.permute.xlu1 (!%p338_p10), %v1885_v3  ;;  %v711_v16 = vld [vmem:[%s2562_s2 + $0x10] sm:$0xff] (!%p338_p10)  ;;  %v713_v18 = vld [vmem:[%s2562_s2 + $0x20] sm:$0xff] (!%p338_p10)  ;;  %v712_v21 = vld [vmem:[%s2562_s2 + $0x18] sm:$0xff] (!%p338_p10)  ;;  %p380_p11 = scmp.lt.s32.totalorder (!%p338_p10), %s1874_s16, 15  ;;  %vm1889_vm0 = vmmov (!%p338_p10), 0  }
  0x15   : > { %v715_v20 = vld [vmem:[%s2562_s2 + $0x30] sm:$0xff] (!%p338_p10)  ;;  %v717_v23 = vld [vmem:[%s2562_s2 + $0x40] sm:$0xff] (!%p338_p10)  ;;  %v714_v28 = vld [vmem:[%s2562_s2 + $0x28] sm:$0xff] (!%p338_p10)  ;;  %s2577_s0 = sld [smem:[#allocation9_spill]] (!%p338_p10)  ;;  %s2474_s28 = sand.u32 (!%p338_p10), 1, %s1866_s14  }
  0x16   : > { %v719_v25 = vld [vmem:[%s2562_s2 + $0x50] sm:$0xff] (!%p338_p10)  ;;  %v721_v27 = vld [vmem:[%s2562_s2 + $0x60] sm:$0xff] (!%p338_p10)  ;;  %v722_v29 = vld [vmem:[%s2562_s2 + $0x68] sm:$0xff] (!%p338_p10)  ;;  %s2571_s29 = sshll.u32 (!%p338_p10), %s1874_s16, 4  ;;  %s1263_s22 = scalar_lea.sflag (!%p338_p10), [#allocation6], %s2474_s28 }
  0x17   : > { %v724_v30 = vld [vmem:[%s2562_s2 + $0x78] sm:$0xff] (!%p338_p10)  ;;  %v718_v35 = vld [vmem:[%s2562_s2 + $0x48] sm:$0xff] (!%p338_p10)  ;;  %v723_v52 = vld [vmem:[%s2562_s2 + $0x70] sm:$0xff] (!%p338_p10)  ;;  %s2483_s12 = scalar_lea.hbm (!%p338_p10), %s2570_s10, %s2571_s29  ;;  %s1891_s24 = smov (!%p338_p10), [#allocation5]  }
  0x18   : > { %v716_v31 = vld [vmem:[%s2562_s2 + $0x38] sm:$0xff] (!%p338_p10)  ;;  %v869_v58 = vld [vmem:[%s2563_s3] sm:$0xff] (!%p338_p10)  ;;  %v870_v59 = vld [vmem:[%s2563_s3 + $0x8] sm:$0xff] (!%p338_p10)  ;;  %s1776_s27 = sshll.u32 (!%p338_p10), %s1891_s24, 4  ;;  %s1777_s27 = int_to_ptr.vmem [resolvable:$false] %s1776_s27 }
  0x19   : > { %v395_v0 = vld [vmem:[%s2576_s1 + $0x10] sm:$0xff] (!%p338_p10)  ;;  %v394_v1 = vld [vmem:[%s2576_s1 + $0x8] sm:$0xff] (!%p338_p10)  ;;  %v393_v4 = vld [vmem:[%s2576_s1] sm:$0xff] (!%p338_p10)  ;;  %v1585_v62 = vpack.c.bf16 (!%p338_p10), %v870_v59, %v869_v58 }
  0x1a   : > { %618 = vperm.xlu0 (!%p338_p10), %1738, %v395_v0   ;;  %416 = vperm.xlu1 (!%p338_p10), %1732, %v394_v1   ;;  %v397_v6 = vld [vmem:[%s2576_s1 + $0x20] sm:$0xff] (!%p338_p10)  ;;  %v399_v7 = vld [vmem:[%s2576_s1 + $0x30] sm:$0xff] (!%p338_p10)  ;;  %v396_v11 = vld [vmem:[%s2576_s1 + $0x18] sm:$0xff] (!%p338_p10) }
  0x1b   : > { %v2027_v8 = vld [vmem:[%s2576_s1 + $0x40] sm:$0xff]  ;;  %v2033_v9 = vld [vmem:[%s2576_s1 + $0x50] sm:$0xff]  ;;  %v398_v15 = vld [vmem:[%s2576_s1 + $0x28] sm:$0xff]  ;;  %s381_s11 = scalar_select %p380_p11, %s1874_s16, 15  ;;  %1586 = vmatprep.subr.bf16.mxu0 %v1585_v62 }
  0x1c   : > { %v2040_v10 = vld [vmem:[%s2576_s1 + $0x60] sm:$0xff]  ;;  %v2050_v12 = vld [vmem:[%s2576_s1 + $0x70] sm:$0xff]  ;;  %v400_v17 = vld [vmem:[%s2576_s1 + $0x38] sm:$0xff]  ;;  %1588 = vmatpush3.bf16.msra.mxu0 %v1585_v62 }
  0x1d   : > { %v402_v19 = vld [vmem:[%s2576_s1 + $0x48] sm:$0xff]  ;;  %v404_v22 = vld [vmem:[%s2576_s1 + $0x58] sm:$0xff]  ;;  %v871_v60 = vld [vmem:[%s2563_s3 + $0x10] sm:$0xff]  ;;  %s1387_s20 = sshll.u32 %s381_s11, 2 }
  0x1e   : > { %1739 = vset.pattern.permute.xlu0 %v1886_v5  ;;  %1733 = vset.pattern.permute.xlu1 %v1886_v5  ;;  %v406_v24 = vld [vmem:[%s2576_s1 + $0x68] sm:$0xff]  ;;  %v2107_v26 = vld [vmem:[%s2576_s1 + $0x78] sm:$0xff]  ;;  %s386_s30 = scalar_lea.vmem %s2577_s0, %s1387_s20  ;;  %s379_s1 = scalar_lea.vmem [#allocation5], %s2474_s28 }
  0x1f   : > { %514 = vperm.xlu1 %1733, %v394_v1   ;;  %510 = vperm.xlu0 %1739, %v393_v4   ;;  %v720_v45 = vld [vmem:[%s2562_s2 + $0x58] sm:$0xff]  ;;  %s1288_s19 = sshll.u32 %s379_s1, 4  ;;  %s1778_s0 = scalar_lea.vmem %s1777_s27, 32  ;;  %s1289_s19 = int_to_ptr.vmem [resolvable:$true] %s1288_s19 }
  0x20   : > { %v872_v63 = vld [vmem:[%s2563_s3 + $0x18] sm:$0xff]  ;;  %s1772_s20 = scalar_lea.vmem %s1289_s19, 16  ;;  %p1779_p1 = scmp.lt.s32.totalorder %s1289_s19, %s1777_s27 }
  0x21   : > { %p1773_p12 = scmp.ne.s32.totalorder %s1289_s19, %s1772_s20  ;;  %p1780_p2 = scmp.lt.s32.totalorder %s1778_s0, %s1772_s20 }
  0x23   : > { %1734 = vset.pattern.permute.xlu1 %v1884_v2  ;;  %526 = vperm.xlu0 %1739, %v397_v6   ;;  %p1774_p13 = pnand %p1773_p12, %p1988_p4  ;;  %p1781_p3 = por %p1780_p2, %p1779_p1 }
  0x24   : > { %610 = vperm.xlu1 %1734, %v393_v4  }
  0x25   : > { %p1775_p0 = pneg %p1774_p13 }
  0x27   : > { %534 = vperm.xlu0 %1739, %v399_v7   ;;  %p1782_p5 = pnand %p1781_p3, %p1775_p0 }
  0x28   : > { %1735 = vset.pattern.permute.xlu1 %v1886_v5 }
  0x29   : > { %518 = vperm.xlu1 %1735, %v395_v0  }
  0x2b   : > { %542 = vperm.xlu0 %1739, %v2027_v8  }
  0x2d   : > { %1736 = vset.pattern.permute.xlu1 %v1884_v2 }
  0x2e   : > { %614 = vperm.xlu1 %1736, %v394_v1   ;;  %v1589_v1 = vpack.c.bf16 %v872_v63, %v871_v60 }
  0x2f   : > { %550 = vperm.xlu0 %1739, %v2033_v9  }
  0x30   : > { %1590 = vmatprep.subr.bf16.mxu0 %v1589_v1 }
  0x31   : > { %1592 = vmatpush3.bf16.msra.mxu0 %v1589_v1 }
  0x32   : > { %1737 = vset.pattern.permute.xlu1 %v1886_v5 }
  0x33   : > { %558 = vperm.xlu0 %1739, %v2040_v10   ;;  %522 = vperm.xlu1 %1737, %v396_v11  }
  0x37   : > { %566 = vperm.xlu0 %1739, %v2050_v12   ;;  %1740 = vset.pattern.permute.xlu1 %v1885_v3 }
  0x38   : > { %727 = vperm.xlu1 %1740, %v709_v13   ;;  %v392_v13 = vld [vmem:[%s386_s30] sm:$0x7] }
  0x3b   : > { %1766 = vset.pattern.permute.xlu0 %v1885_v3 }
  0x3c   : > { %411 = vperm.xlu0 %1766, %v393_v4   ;;  %431 = vperm.xlu1 %1740, %v397_v6   ;;  %v490_v4 = vshrl.u32 %v489_v61, 7 }
  0x40   : > { %421 = vperm.xlu0 %1766, %v395_v0   ;;  %1741 = vset.pattern.permute.xlu1 %v1884_v2 }
  0x41   : > { %622 = vperm.xlu1 %1741, %v396_v11  }
  0x44   : > { %426 = vperm.xlu0 %1766, %v396_v11   ;;  %v575_v11 = vsub.s32 1, %v490_v4 }
  0x45   : > { %1742 = vset.pattern.permute.xlu1 %v1885_v3 }
  0x46   : > { %732 = vperm.xlu1 %1742, %v710_v14  }
  0x48   : > { %436 = vperm.xlu0 %1766, %v398_v15  }
  0x4a   : > { %1743 = vset.pattern.permute.xlu1 %v1886_v5 }
  0x4b   : > { %530 = vperm.xlu1 %1743, %v398_v15  }
  0x4c   : > { %737 = vperm.xlu0 %1766, %v711_v16   ;;  %v878_v16 = vld [vmem:[%s2563_s3 + $0x48] sm:$0xff] }
  0x4f   : > { %1744 = vset.pattern.permute.xlu1 %v1884_v2 }
  0x50   : > { %446 = vperm.xlu0 %1766, %v400_v17   ;;  %626 = vperm.xlu1 %1744, %v397_v6  }
  0x54   : > { %747 = vperm.xlu0 %1766, %v713_v18   ;;  %1745 = vset.pattern.permute.xlu1 %v1885_v3  ;;  %v675_v18 = vsub.s32 2, %v490_v4 }
  0x55   : > { %441 = vperm.xlu1 %1745, %v399_v7  }
  0x58   : > { %456 = vperm.xlu0 %1766, %v402_v19  }
  0x59   : > { %1746 = vset.pattern.permute.xlu1 %v1884_v2 }
  0x5a   : > { %630 = vperm.xlu1 %1746, %v398_v15   ;;  %v877_v15 = vld [vmem:[%s2563_s3 + $0x40] sm:$0xff] }
  0x5c   : > { %757 = vperm.xlu0 %1766, %v715_v20   ;;  %v1601_v20 = vpack.c.bf16 %v878_v16, %v877_v15 }
  0x5e   : > { %1747 = vset.pattern.permute.xlu1 %v1885_v3 }
  0x5f   : > { %742 = vperm.xlu1 %1747, %v712_v21  }
  0x60   : > { %466 = vperm.xlu0 %1766, %v404_v22  }
  0x63   : > { %1748 = vset.pattern.permute.xlu1 %v1886_v5 }
  0x64   : > { %538 = vperm.xlu1 %1748, %v400_v17   ;;  %767 = vperm.xlu0 %1766, %v717_v23   ;;  %v880_v23 = vld [vmem:[%s2563_s3 + $0x58] sm:$0xff] }
  0x68   : > { %1749 = vset.pattern.permute.xlu1 %v1884_v2  ;;  %476 = vperm.xlu0 %1766, %v406_v24  }
  0x69   : > { %634 = vperm.xlu1 %1749, %v399_v7   ;;  %v875_v7 = vld [vmem:[%s2563_s3 + $0x30] sm:$0xff] }
  0x6c   : > { %777 = vperm.xlu0 %1766, %v719_v25  }
  0x6d   : > { %1750 = vset.pattern.permute.xlu1 %v1885_v3 }
  0x6e   : > { %451 = vperm.xlu1 %1750, %v2027_v8  }
  0x70   : > { %486 = vperm.xlu0 %1766, %v2107_v26  }
  0x72   : > { %1751 = vset.pattern.permute.xlu1 %v1884_v2 }
  0x73   : > { %638 = vperm.xlu1 %1751, %v400_v17  }
  0x74   : > { %787 = vperm.xlu0 %1766, %v721_v27   ;;  %v2264_v27 = vrot.slane %v392_v13, %v675_v18 }
  0x77   : > { %1752 = vset.pattern.permute.xlu1 %v1885_v3 }
  0x78   : > { %752 = vperm.xlu1 %1752, %v714_v28   ;;  %792 = vperm.xlu0 %1766, %v722_v29   ;;  %v881_v29 = vld [vmem:[%s2563_s3 + $0x60] sm:$0xff] }
  0x7c   : > { %1753 = vset.pattern.permute.xlu1 %v1886_v5  ;;  %802 = vperm.xlu0 %1766, %v724_v30   ;;  %v882_v30 = vld [vmem:[%s2563_s3 + $0x68] sm:$0xff] }
  0x7d   : > { %546 = vperm.xlu1 %1753, %v402_v19  }
  0x81   : > { %1754 = vset.pattern.permute.xlu1 %v1884_v2 }
  0x82   : > { %642 = vperm.xlu1 %1754, %v2027_v8   ;;  %v876_v8 = vld [vmem:[%s2563_s3 + $0x38] sm:$0xff] }
  0x86   : > { %1755 = vset.pattern.permute.xlu1 %v1885_v3 }
  0x87   : > { %461 = vperm.xlu1 %1755, %v2033_v9  }
  0x8b   : > { %1756 = vset.pattern.permute.xlu1 %v1884_v2 }
  0x8c   : > { %646 = vperm.xlu1 %1756, %v402_v19   ;;  %v2251_v19 = vrot.slane %v392_v13, %v575_v11 }
  0x90   : > { %1757 = vset.pattern.permute.xlu1 %v1885_v3 }
  0x91   : > { %762 = vperm.xlu1 %1757, %v716_v31  }
  0x95   : > { %1758 = vset.pattern.permute.xlu1 %v1886_v5 }
  0x96   : > { %554 = vperm.xlu1 %1758, %v404_v22  }
  0x99   : > { %v2136_v32 = vpop.permute.xlu1 %416  ;;  %v2156_v38 = vpop.permute.xlu0 %618 }
  0x9a   : > { %1759 = vset.pattern.permute.xlu1 %v1884_v2 }
  0x9b   : > { %650 = vperm.xlu1 %1759, %v2033_v9  }
  0x9e   : > { %v2140_v33 = vpop.permute.xlu1 %514  ;;  %v2162_v40 = vpop.permute.xlu0 %510 }
  0x9f   : > { %1760 = vset.pattern.permute.xlu1 %v1885_v3  ;;  %v578_v58 = vmul.f32 %v2251_v19, %v2140_v33  ;;  %v679_v33 = vmul.f32 %v2264_v27, %v2156_v38 }
  0xa0   : > { %471 = vperm.xlu1 %1760, %v2040_v10  }
  0xa2   : > { %v2170_v43 = vpop.permute.xlu0 %526 }
  0xa3   : > { %v2144_v34 = vpop.permute.xlu1 %610 }
  0xa4   : > { %1761 = vset.pattern.permute.xlu1 %v1884_v2 }
  0xa5   : > { %654 = vperm.xlu1 %1761, %v404_v22   ;;  %v879_v22 = vld [vmem:[%s2563_s3 + $0x50] sm:$0xff] }
  0xa6   : > { %v2178_v46 = vpop.permute.xlu0 %534  ;;  %v1605_v28 = vpack.c.bf16 %v880_v23, %v879_v22 }
  0xa7   : > { %v583_v23 = vmul.f32 %v2251_v19, %v2178_v46 }
  0xa8   : > { %v2150_v36 = vpop.permute.xlu1 %518 }
  0xa9   : > { %1762 = vset.pattern.permute.xlu1 %v1885_v3 }
  0xaa   : > { %772 = vperm.xlu1 %1762, %v718_v35   ;;  %v2184_v48 = vpop.permute.xlu0 %542 }
  0xad   : > { %v2153_v37 = vpop.permute.xlu1 %614 }
  0xae   : > { %1763 = vset.pattern.permute.xlu1 %v1886_v5  ;;  %v2191_v50 = vpop.permute.xlu0 %550  ;;  %v678_v61 = vmul.f32 %v2264_v27, %v2153_v37 }
  0xaf   : > { %562 = vperm.xlu1 %1763, %v406_v24  }
  0xb2   : > { %v2158_v39 = vpop.permute.xlu1 %522  ;;  %v2199_v53 = vpop.permute.xlu0 %558 }
  0xb3   : > { %1764 = vset.pattern.permute.xlu1 %v1884_v2 }
  0xb4   : > { %658 = vperm.xlu1 %1764, %v2040_v10   ;;  %v491_v10 = vsub.s32 0, %v490_v4 }
  0xb6   : > { %v2207_v56 = vpop.permute.xlu0 %566  ;;  %v2249_v17 = vrot.slane %v392_v13, %v491_v10 }
  0xb7   : > { %v2164_v41 = vpop.permute.xlu1 %727 }
  0xb8   : > { %1765 = vset.pattern.permute.xlu1 %v1885_v3  ;;  %v494_v60 = vmul.f32 %v2249_v17, %v2136_v32 }
  0xb9   : > { %481 = vperm.xlu1 %1765, %v2050_v12  }
  0xba   : > { %v594_v1 = vadd.f32 %v578_v58, %v494_v60 }
  0xbb   : > { %v2168_v42 = vpop.permute.xlu1 %431  ;;  %v412_v0 = vpop.permute.xlu0 %411 }
  0xbc   : > { %v493_v25 = vmul.f32 %v2249_v17, %v412_v0  ;;  %v694_v4 = vadd.f32 %v678_v61, %v594_v1 }
  0xbd   : > { %1767 = vset.pattern.permute.xlu1 %v1884_v2 }
  0xbe   : > { %662 = vperm.xlu1 %1767, %v406_v24   ;;  %v577_v24 = vmul.f32 %v2251_v19, %v2162_v40 }
  0xbf   : > { %v422_v9 = vpop.permute.xlu0 %421 }
  0xc0   : > { %v2173_v44 = vpop.permute.xlu1 %622  ;;  %v593_v31 = vadd.f32 %v577_v24, %v493_v25  ;;  %v495_v62 = vmul.f32 %v2249_v17, %v422_v9 }
  0xc1   : > { %v680_v11 = vmul.f32 %v2264_v27, %v2173_v44 }
  0xc2   : > { %1768 = vset.pattern.permute.xlu1 %v1885_v3 }
  0xc3   : > { %782 = vperm.xlu1 %1768, %v720_v45   ;;  %v427_v21 = vpop.permute.xlu0 %426  ;;  %v677_v45 = vmul.f32 %v2264_v27, %v2144_v34  ;;  %v579_v34 = vmul.f32 %v2251_v19, %v2150_v36  ;;  %v581_v36 = vmul.f32 %v2251_v19, %v2170_v43 }
  0xc4   : > { %v496_v32 = vmul.f32 %v2249_v17, %v427_v21 }
  0xc5   : > { %v2181_v47 = vpop.permute.xlu1 %732  ;;  %v693_v59 = vadd.f32 %v677_v45, %v593_v31 }
  0xc7   : > { %1769 = vset.pattern.permute.xlu1 %v1886_v5  ;;  %v437_v35 = vpop.permute.xlu0 %436 }
  0xc8   : > { %570 = vperm.xlu1 %1769, %v2107_v26   ;;  %v498_v43 = vmul.f32 %v2249_v17, %v437_v35 }
  0xca   : > { %v2187_v49 = vpop.permute.xlu1 %530 }
  0xcb   : > { %v738_v0 = vpop.permute.xlu0 %737 }
  0xcc   : > { %1770 = vset.pattern.permute.xlu1 %v1884_v2  ;;  %v873_v2 = vld [vmem:[%s2563_s3 + $0x20] sm:$0xff] }
  0xcd   : > { %666 = vperm.xlu1 %1770, %v2050_v12   ;;  %v1597_v12 = vpack.c.bf16 %v876_v8, %v875_v7  ;;  %v806_v8 = vadd.f32 %v2181_v47, %v694_v4 }
  0xcf   : > { %v2193_v51 = vpop.permute.xlu1 %626  ;;  %v447_v9 = vpop.permute.xlu0 %446 }
  0xd0   : > { %v500_v46 = vmul.f32 %v2249_v17, %v447_v9  ;;  %v883_v9 = vld [vmem:[%s2563_s3 + $0x70] sm:$0xff] }
  0xd1   : > { %670 = vperm.xlu1 %1770, %v2107_v26  }
  0xd3   : > { %v748_v18 = vpop.permute.xlu0 %747 }
  0xd4   : > { %v2201_v54 = vpop.permute.xlu1 %441 }
  0xd5   : > { %1771 = vset.pattern.permute.xlu1 %v1885_v3  ;;  %v874_v3 = vld [vmem:[%s2563_s3 + $0x28] sm:$0xff] }
  0xd6   : > { %797 = vperm.xlu1 %1771, %v723_v52   ;;  %v1593_v6 = vpack.c.bf16 %v874_v3, %v873_v2  ;;  %v1609_v52 = vpack.c.bf16 %v882_v30, %v881_v29  ;;  %v805_v2 = vadd.f32 %v2164_v41, %v693_v59  ;;  %v595_v3 = vadd.f32 %v579_v34, %v495_v62 }
  0xd7   : > { %v497_v41 = vmul.f32 %v2249_v17, %v2168_v42  ;;  %v582_v42 = vmul.f32 %v2251_v19, %v2187_v49  ;;  %v457_v25 = vpop.permute.xlu0 %456  ;;  %v585_v59 = vmul.f32 %v2251_v19, %v2184_v48 }
  0xd8   : > { %1594 = vmatprep.subr.bf16.mxu0 %v1593_v6  ;;  %v821_v7 = vmax.f32 %v805_v2, 0.0  ;;  %v695_v10 = vadd.f32 %v679_v33, %v595_v3 }
  0xd9   : > { %v2204_v55 = vpop.permute.xlu1 %630  ;;  %1596 = vmatpush3.bf16.msra.mxu0 %v1593_v6  ;;  %v580_v6 = vmul.f32 %v2251_v19, %v2158_v39  ;;  %v681_v39 = vmul.f32 %v2264_v27, %v2193_v51  ;;  %v597_v47 = vadd.f32 %v581_v36, %v497_v41  ;;  %v499_v51 = vmul.f32 %v2249_v17, %v2201_v54  ;;  %v884_v36 = vld [vmem:[%s2563_s3 + $0x78] sm:$0xff] }
  0xda   : > { %1598 = vmatprep.subr.bf16.mxu0 %v1597_v12  ;;  %v807_v13 = vadd.f32 %v738_v0, %v695_v10  ;;  %v682_v24 = vmul.f32 %v2264_v27, %v2204_v55  ;;  %v1613_v41 = vpack.c.bf16 %v884_v36, %v883_v9 }
  0xdb   : > { %v596_v38 = vadd.f32 %v580_v6, %v496_v32  ;;  %v697_v21 = vadd.f32 %v681_v39, %v597_v47  ;;  %v599_v31 = vadd.f32 %v583_v23, %v499_v51  ;;  %v758_v58 = vpop.permute.xlu0 %757 }
  0xdd   : > { %1600 = vmatpush3.bf16.msra.mxu0 %v1597_v12  ;;  %v822_v12 = vmax.f32 %v806_v8, 0.0  ;;  %v696_v16 = vadd.f32 %v680_v11, %v596_v38  ;;  %v809_v29 = vadd.f32 %v748_v18, %v697_v21  ;;  %v502_v38 = vmul.f32 %v2249_v17, %v457_v25 }
  0xde   : > { %v2210_v57 = vpop.permute.xlu1 %742  ;;  %1602 = vmatprep.subr.bf16.mxu0 %v1601_v20 }
  0xdf   : > { %v808_v22 = vadd.f32 %v2210_v57, %v696_v16  ;;  %v825_v45 = vmax.f32 %v809_v29, 0.0 }
  0xe1   : > { %1604 = vmatpush3.bf16.msra.mxu0 %v1601_v20  ;;  %v823_v20 = vmax.f32 %v807_v13, 0.0  ;;  %v824_v30 = vmax.f32 %v808_v22, 0.0 }
  0xe2   : > { %1606 = vmatprep.subr.bf16.mxu0 %v1605_v28 }
  0xe3   : > { %v2230_v5 = vpop.permute.xlu1 %538 }
  0xe4   : > { %v584_v54 = vmul.f32 %v2251_v19, %v2230_v5  ;;  %v467_v5 = vpop.permute.xlu0 %466 }
  0xe5   : > { %1608 = vmatpush3.bf16.msra.mxu0 %v1605_v28  ;;  %v598_v28 = vadd.f32 %v582_v42, %v498_v43  ;;  %v504_v25 = vmul.f32 %v2249_v17, %v467_v5 }
  0xe6   : > { %1610 = vmatprep.subr.bf16.mxu0 %v1609_v52  ;;  %v600_v62 = vadd.f32 %v584_v54, %v500_v46 }
  0xe7   : > { %v698_v57 = vadd.f32 %v682_v24, %v598_v28 }
  0xe8   : > { %v2241_v14 = vpop.permute.xlu1 %634 }
  0xe9   : > { %1612 = vmatpush3.bf16.msra.mxu0 %v1609_v52  ;;  %v683_v49 = vmul.f32 %v2264_v27, %v2241_v14 }
  0xea   : > { %1614 = vmatprep.subr.bf16.mxu0 %v1613_v41 }
  0xeb   : > { %v699_v52 = vadd.f32 %v683_v49, %v599_v31  ;;  %v589_v49 = vmul.f32 %v2251_v19, %v2199_v53 }
  0xed   : > { %v2262_v26 = vpop.permute.xlu1 %451  ;;  %v811_v0 = vadd.f32 %v758_v58, %v699_v52  ;;  %1616 = vmatpush3.bf16.msra.mxu0 %v1613_v41 }
  0xee   : > { %v501_v60 = vmul.f32 %v2249_v17, %v2262_v26  ;;  %v768_v26 = vpop.permute.xlu0 %767 }
  0xef   : > { %v827_v33 = vmax.f32 %v811_v0, 0.0 }
  0xf0   : > { %v601_v2 = vadd.f32 %v585_v59, %v501_v60 }
  0xf2   : > { %v2272_v40 = vpop.permute.xlu1 %638  ;;  %v477_v47 = vpop.permute.xlu0 %476 }
  0xf3   : > { %v684_v14 = vmul.f32 %v2264_v27, %v2272_v40  ;;  %v506_v52 = vmul.f32 %v2249_v17, %v477_v47 }
  0xf7   : > { %v753_v63 = vpop.permute.xlu1 %752 }
  0xf8   : > { %v810_v55 = vadd.f32 %v753_v63, %v698_v57  ;;  %v700_v63 = vadd.f32 %v684_v14, %v600_v62 }
  0xfa   : > { %v826_v1 = vmax.f32 %v810_v55, 0.0 }
  0xfc   : > { %v2289_v37 = vpop.permute.xlu1 %546 }
  0xfd   : > { %v586_v10 = vmul.f32 %v2251_v19, %v2289_v37  ;;  %v778_v37 = vpop.permute.xlu0 %777 }
  0xff   : > { %837 = vxpose.xlu1.b32.start [1/16] %v821_v7, 128  ;;  %v602_v16 = vadd.f32 %v586_v10, %v502_v38 }
 0x101   : > { %v643_v15 = vpop.permute.xlu1 %642 }
 0x102   : > { %v685_v34 = vmul.f32 %v2264_v27, %v643_v15 }
 0x103   : > { %838 = vxpose.xlu1.b32.cont [2/16] %v822_v12, 128  ;;  %v587_v12 = vmul.f32 %v2251_v19, %v2191_v50 }
 0x104   : > { %v701_v3 = vadd.f32 %v685_v34, %v601_v2 }
 0x106   : > { %v462_v44 = vpop.permute.xlu1 %461  ;;  %v813_v4 = vadd.f32 %v768_v26, %v701_v3  ;;  %v591_v26 = vmul.f32 %v2251_v19, %v2207_v56 }
 0x107   : > { %839 = vxpose.xlu1.b32.cont [3/16] %v823_v20, 128  ;;  %v503_v11 = vmul.f32 %v2249_v17, %v462_v44 }
 0x108   : > { %v829_v7 = vmax.f32 %v813_v4, 0.0 }
 0x109   : > { %v603_v43 = vadd.f32 %v587_v12, %v503_v11 }
 0x10b   : > { %v647_v35 = vpop.permute.xlu1 %646  ;;  %840 = vxpose.xlu1.b32.cont [4/16] %v824_v30, 128  ;;  %v487_v30 = vpop.permute.xlu0 %486 }
 0x10c   : > { %v686_v13 = vmul.f32 %v2264_v27, %v647_v35  ;;  %v508_v4 = vmul.f32 %v2249_v17, %v487_v30 }
 0x10e   : > { %v702_v42 = vadd.f32 %v686_v13, %v602_v16 }
 0x10f   : > { %841 = vxpose.xlu1.b32.cont [5/16] %v825_v45, 128  ;;  %v788_v60 = vpop.permute.xlu0 %787 }
 0x110   : > { %v763_v61 = vpop.permute.xlu1 %762 }
 0x111   : > { %v812_v48 = vadd.f32 %v763_v61, %v700_v63 }
 0x113   : > { %842 = vxpose.xlu1.b32.cont [6/16] %v826_v1, 128  ;;  %v828_v6 = vmax.f32 %v812_v48, 0.0  ;;  %v793_v5 = vpop.permute.xlu0 %792 }
 0x115   : > { %v555_v32 = vpop.permute.xlu1 %554 }
 0x116   : > { %v588_v28 = vmul.f32 %v2251_v19, %v555_v32 }
 0x117   : > { %843 = vxpose.xlu1.b32.cont [7/16] %v827_v33, 128  ;;  %v803_v11 = vpop.permute.xlu0 %802 }
 0x118   : > { %v604_v46 = vadd.f32 %v588_v28, %v504_v25  ;;  %v1887_v25 = vmov 0.0|0.0   ;;  %v1083_v28 = vld [vmem:[%s2565_s5 + $0x10] sm:$0xff] }
 0x119   : > { %1617 = vmatprep.subr.bf16.mxu1 %v1887_v25  ;;  %1641 = vmatprep.subr.bf16.mxu0 %v1887_v25 }
 0x11a   : > { %v651_v40 = vpop.permute.xlu1 %650 }
 0x11b   : > { %844 = vxpose.xlu1.b32.cont [8/16] %v828_v6, 128  ;;  %v687_v39 = vmul.f32 %v2264_v27, %v651_v40 }
 0x11d   : > { %v703_v18 = vadd.f32 %v687_v39, %v603_v43 }
 0x11f   : > { %v472_v8 = vpop.permute.xlu1 %471  ;;  %845 = vxpose.xlu1.b32.cont [9/16] %v829_v7, 128  ;;  %v815_v22 = vadd.f32 %v778_v37, %v703_v18 }
 0x120   : > { %v505_v29 = vmul.f32 %v2249_v17, %v472_v8 }
 0x121   : > { %v831_v51 = vmax.f32 %v815_v22, 0.0 }
 0x122   : > { %v605_v45 = vadd.f32 %v589_v49, %v505_v29  ;;  %v1084_v29 = vld [vmem:[%s2565_s5 + $0x18] sm:$0xff]  ;;  %v1888_v49 = vmov -inf  }
 0x123   : > { %v1621_v30 = vpack.c.bf16 %v1084_v29, %v1083_v28  ;;  %391 = vst [vmem:[#allocation2] sm:$0x1] %v1888_v49 }
 0x124   : > { %v655_v15 = vpop.permute.xlu1 %654 }
 0x125   : > { %v688_v31 = vmul.f32 %v2264_v27, %v655_v15 }
 0x127   : > { %v704_v59 = vadd.f32 %v688_v31, %v604_v46  ;;  %v1085_v31 = vld [vmem:[%s2565_s5 + $0x20] sm:$0xff]  ;;  %v1087_v46 = vld [vmem:[%s2565_s5 + $0x30] sm:$0xff] }
 0x129   : > { %v773_v20 = vpop.permute.xlu1 %772 }
 0x12a   : > { %v814_v21 = vadd.f32 %v773_v20, %v702_v42 }
 0x12c   : > { %v830_v44 = vmax.f32 %v814_v21, 0.0 }
 0x12e   : > { %v563_v23 = vpop.permute.xlu1 %562  ;;  %846 = vxpose.xlu1.b32.cont [10/16] %v830_v44, 128 }
 0x12f   : > { %v590_v54 = vmul.f32 %v2251_v19, %v563_v23 }
 0x131   : > { %v606_v61 = vadd.f32 %v590_v54, %v506_v52  ;;  %v1089_v52 = vld [vmem:[%s2565_s5 + $0x40] sm:$0xff] }
 0x132   : > { %847 = vxpose.xlu1.b32.cont [11/16] %v831_v51, 128  ;;  %v1081_v51 = vld [vmem:[%s2565_s5] sm:$0xff] }
 0x133   : > { %v659_v50 = vpop.permute.xlu1 %658 }
 0x134   : > { %v689_v57 = vmul.f32 %v2264_v27, %v659_v50  ;;  %v1082_v50 = vld [vmem:[%s2565_s5 + $0x8] sm:$0xff] }
 0x136   : > { %v705_v55 = vadd.f32 %v689_v57, %v605_v45  ;;  %v1086_v57 = vld [vmem:[%s2565_s5 + $0x28] sm:$0xff]  ;;  %v1088_v45 = vld [vmem:[%s2565_s5 + $0x38] sm:$0xff] }
 0x137   : > { %v1627_v54 = vpack.c.bf16 %v1088_v45, %v1087_v46 }
 0x138   : > { %v482_v24 = vpop.permute.xlu1 %481  ;;  %v817_v53 = vadd.f32 %v788_v60, %v705_v55  ;;  %v1090_v55 = vld [vmem:[%s2565_s5 + $0x48] sm:$0xff]  ;;  %v1092_v60 = vld [vmem:[%s2565_s5 + $0x58] sm:$0xff] }
 0x139   : > { %v507_v48 = vmul.f32 %v2249_v17, %v482_v24  ;;  %v1618_v24 = vpack.c.bf16 %v1082_v50, %v1081_v51 }
 0x13a   : > { %v833_v2 = vmax.f32 %v817_v53, 0.0 }
 0x13b   : > { %v607_v8 = vadd.f32 %v591_v26, %v507_v48  ;;  %1619 = vmatpush3.bf16.msra.mxu1 %v1618_v24  ;;  %v1173_v48 = vld [vmem:[%s2567_s7 + $0x18] sm:$0xff]  ;;  %v1174_v26 = vld [vmem:[%s2567_s7 + $0x20] sm:$0xff] }
 0x13c   : > { %1620 = vmatprep.subr.bf16.mxu1 %v1887_v25 }
 0x13d   : > { %v663_v35 = vpop.permute.xlu1 %662 }
 0x13e   : > { %v690_v58 = vmul.f32 %v2264_v27, %v663_v35  ;;  %v1624_v35 = vpack.c.bf16 %v1086_v57, %v1085_v31 }
 0x13f   : > { %1622 = vmatpush3.bf16.msra.mxu1 %v1621_v30 }
 0x140   : > { %v706_v0 = vadd.f32 %v690_v58, %v606_v61  ;;  %1623 = vmatprep.subr.bf16.mxu1 %v1887_v25  ;;  %v1630_v58 = vpack.c.bf16 %v1090_v55, %v1089_v52  ;;  %v1093_v61 = vld [vmem:[%s2565_s5 + $0x60] sm:$0xff] }
 0x142   : > { %v783_v14 = vpop.permute.xlu1 %782  ;;  %v818_v63 = vadd.f32 %v793_v5, %v706_v0  ;;  %v1095_v0 = vld [vmem:[%s2565_s5 + $0x70] sm:$0xff]  ;;  %v1890_v5 = vmov 0.0  }
 0x143   : > { %v816_v62 = vadd.f32 %v783_v14, %v704_v59  ;;  %1625 = vmatpush3.bf16.msra.mxu1 %v1624_v35  ;;  %v1091_v59 = vld [vmem:[%s2565_s5 + $0x50] sm:$0xff]  ;;  %1547 = vmatprep.mubr.msk.f32.mxu1 %vm1889_vm0, %v1890_v5 }
 0x144   : > { %v834_v3 = vmax.f32 %v818_v63, 0.0  ;;  %1626 = vmatprep.subr.bf16.mxu1 %v1887_v25  ;;  %v1633_v14 = vpack.c.bf16 %v1092_v60, %v1091_v59  ;;  %v1171_v63 = vld [vmem:[%s2567_s7 + $0x8] sm:$0xff] }
 0x145   : > { %v832_v1 = vmax.f32 %v816_v62, 0.0  ;;  %v1094_v62 = vld [vmem:[%s2565_s5 + $0x68] sm:$0xff] }
 0x146   : > { %v1636_v53 = vpack.c.bf16 %v1094_v62, %v1093_v61 }
 0x147   : > { %v571_v34 = vpop.permute.xlu1 %570  ;;  %848 = vxpose.xlu1.b32.cont [12/16] %v832_v1, 128  ;;  %1628 = vmatpush3.bf16.msra.mxu1 %v1627_v54  ;;  %v1096_v1 = vld [vmem:[%s2565_s5 + $0x78] sm:$0xff] }
 0x148   : > { %v592_v32 = vmul.f32 %v2251_v19, %v571_v34  ;;  %1629 = vmatprep.subr.bf16.mxu1 %v1887_v25  ;;  %v1639_v34 = vpack.c.bf16 %v1096_v1, %v1095_v0 }
 0x14a   : > { %v608_v9 = vadd.f32 %v592_v32, %v508_v4  ;;  %v1175_v4 = vld [vmem:[%s2567_s7 + $0x28] sm:$0xff] }
 0x14b   : > { %849 = vxpose.xlu1.b32.cont [13/16] %v833_v2, 128  ;;  %1631 = vmatpush3.bf16.msra.mxu1 %v1630_v58  ;;  %v1170_v2 = vld [vmem:[%s2567_s7] sm:$0xff] }
 0x14c   : > { %v667_v33 = vpop.permute.xlu1 %666  ;;  %1632 = vmatprep.subr.bf16.mxu1 %v1887_v25 }
 0x14d   : > { %v691_v6 = vmul.f32 %v2264_v27, %v667_v33  ;;  %v1172_v33 = vld [vmem:[%s2567_s7 + $0x10] sm:$0xff] }
 0x14e   : > { %v1645_v32 = vpack.c.bf16 %v1173_v48, %v1172_v33 }
 0x14f   : > { %850 = vxpose.xlu1.b32.cont [14/16] %v834_v3, 128  ;;  %v707_v41 = vadd.f32 %v691_v6, %v607_v8  ;;  %1634 = vmatpush3.bf16.msra.mxu1 %v1633_v14  ;;  %v1642_v3 = vpack.c.bf16 %v1171_v63, %v1170_v2  ;;  %v1648_v6 = vpack.c.bf16 %v1175_v4, %v1174_v26 }
 0x150   : > { %v671_v40 = vpop.permute.xlu1 %670  ;;  %1635 = vmatprep.subr.bf16.mxu1 %v1887_v25 }
 0x151   : > { %v692_v7 = vmul.f32 %v2264_v27, %v671_v40  ;;  %v1176_v40 = vld [vmem:[%s2567_s7 + $0x30] sm:$0xff] }
 0x153   : > { %v708_v36 = vadd.f32 %v692_v7, %v608_v9  ;;  %1637 = vmatpush3.bf16.msra.mxu1 %v1636_v53  ;;  %v1177_v7 = vld [vmem:[%s2567_s7 + $0x38] sm:$0xff]  ;;  %v1178_v9 = vld [vmem:[%s2567_s7 + $0x40] sm:$0xff] }
 0x154   : > { %1638 = vmatprep.subr.bf16.mxu1 %v1887_v25  ;;  %v1651_v8 = vpack.c.bf16 %v1177_v7, %v1176_v40 }
 0x155   : > { %v798_v38 = vpop.permute.xlu1 %797  ;;  %v820_v12 = vadd.f32 %v803_v11, %v708_v36  ;;  %v1179_v36 = vld [vmem:[%s2567_s7 + $0x48] sm:$0xff] }
 0x156   : > { %v819_v10 = vadd.f32 %v798_v38, %v707_v41  ;;  %v1654_v41 = vpack.c.bf16 %v1179_v36, %v1178_v9  ;;  %v1180_v38 = vld [vmem:[%s2567_s7 + $0x50] sm:$0xff] }
 0x157   : > { %v836_v39 = vmax.f32 %v820_v12, 0.0  ;;  %1640 = vmatpush3.bf16.msra.mxu1 %v1639_v34  ;;  %v1182_v12 = vld [vmem:[%s2567_s7 + $0x60] sm:$0xff] }
 0x158   : > { %v835_v13 = vmax.f32 %v819_v10, 0.0  ;;  %v1181_v10 = vld [vmem:[%s2567_s7 + $0x58] sm:$0xff] }
 0x159   : > { %v1657_v11 = vpack.c.bf16 %v1181_v10, %v1180_v38 }
 0x15a   : > { %851 = vxpose.xlu1.b32.cont [15/16] %v835_v13, 128  ;;  %v1183_v13 = vld [vmem:[%s2567_s7 + $0x68] sm:$0xff] }
 0x15e   : > { %852 = vxpose.xlu1.b32.end [16/16] %v836_v39, 128  ;;  %v1660_v39 = vpack.c.bf16 %v1183_v13, %v1182_v12 }
 0x1a2   : > { %v853_v56 = vpop.trf.xlu1 }
 0x1a3   : > { %1491 = vmatprep.mubr.f32.mxu0 %v853_v56 }
 0x1a6   : > { %v854_v17 = vpop.trf.xlu1 }
 0x1a7   : > { %1492 = vmatmul.mubr.f32.vlgmr.msra.gmra.mrb[0].mxu0 %v854_v17 }
 0x1a8   : > { %1643 = vmatpush3.bf16.msra.mxu0 %v1642_v3 }
 0x1a9   : > { %1644 = vmatprep.subr.bf16.mxu0 %v1887_v25 }
 0x1aa   : > { %v855_v19 = vpop.trf.xlu1 }
 0x1ab   : > { %1494 = vmatprep.mubr.f32.mxu0 %v855_v19 }
 0x1ac   : > { %1646 = vmatpush3.bf16.msra.mxu0 %v1645_v32 }
 0x1ad   : > { %1647 = vmatprep.subr.bf16.mxu0 %v1887_v25 }
 0x1ae   : > { %v856_v15 = vpop.trf.xlu1 }
 0x1af   : > { %1495 = vmatmul.mubr.f32.gmra.mrb[2].mxu0 %v856_v15 }
 0x1b0   : > { %1649 = vmatpush3.bf16.msra.mxu0 %v1648_v6 }
 0x1b1   : > { %1650 = vmatprep.subr.bf16.mxu0 %v1887_v25 }
 0x1b2   : > { %v857_v27 = vpop.trf.xlu1 }
 0x1b3   : > { %1497 = vmatprep.mubr.f32.mxu0 %v857_v27  ;;  %v1388_v27 = vld [vmem:[%s2564_s4] ss:$0 sm:$0xff] }
 0x1b4   : > { %1652 = vmatpush3.bf16.msra.mxu0 %v1651_v8 }
 0x1b5   : > { %1653 = vmatprep.subr.bf16.mxu0 %v1887_v25 }
 0x1b6   : > { %v858_v47 = vpop.trf.xlu1 }
 0x1b7   : > { %1498 = vmatmul.mubr.f32.gmra.mrb[4].mxu0 %v858_v47 }
 0x1b8   : > { %1655 = vmatpush3.bf16.msra.mxu0 %v1654_v41 }
 0x1b9   : > { %1656 = vmatprep.subr.bf16.mxu0 %v1887_v25 }
 0x1ba   : > { %v859_v16 = vpop.trf.xlu1 }
 0x1bb   : > { %1500 = vmatprep.mubr.f32.mxu0 %v859_v16 }
 0x1bc   : > { %1658 = vmatpush3.bf16.msra.mxu0 %v1657_v11 }
 0x1bd   : > { %1659 = vmatprep.subr.bf16.mxu0 %v1887_v25 }
 0x1be   : > { %v860_v43 = vpop.trf.xlu1 }
 0x1bf   : > { %1501 = vmatmul.mubr.f32.gmra.mrb[6].mxu0 %v860_v43 }
 0x1c0   : > { %1661 = vmatpush3.bf16.msra.mxu0 %v1660_v39 }
 0x1c1   : > { %1662 = vmatprep.subr.bf16.mxu0 %v1887_v25 }
 0x1c2   : > { %v861_v18 = vpop.trf.xlu1 }
 0x1c3   : > { %1503 = vmatprep.mubr.f32.mxu0 %v861_v18 }
 0x1c6   : > { %v862_v42 = vpop.trf.xlu1 }
 0x1c7   : > { %1504 = vmatmul.mubr.f32.gmra.mrb[8].mxu0 %v862_v42 }
 0x1ca   : > { %v863_v20 = vpop.trf.xlu1 }
 0x1cb   : > { %1506 = vmatprep.mubr.f32.mxu0 %v863_v20 }
 0x1ce   : > { %v864_v21 = vpop.trf.xlu1 }
 0x1cf   : > { %1507 = vmatmul.mubr.f32.gmra.mrb[10].mxu0 %v864_v21 }
 0x1d2   : > { %v865_v37 = vpop.trf.xlu1 }
 0x1d3   : > { %1509 = vmatprep.mubr.f32.mxu0 %v865_v37 }
 0x1d6   : > { %v866_v22 = vpop.trf.xlu1 }
 0x1d7   : > { %1510 = vmatmul.mubr.f32.gmra.mrb[12].mxu0 %v866_v22 }
 0x1da   : > { %v867_v44 = vpop.trf.xlu1 }
 0x1db   : > { %1512 = vmatprep.mubr.f32.mxu0 %v867_v44 }
 0x1de   : > { %v868_v23 = vpop.trf.xlu1 }
 0x1df   : > { %1513 = vmatmul.mubr.f32.gmra.mrb[14].mxu0 %v868_v23 }
 0x1e0   : > { %1582 = vmatprep.mubr.msk.f32.mxu0 %vm1889_vm0, %v1890_v5 }
 0x27a   : > { %v1493_v56 = vpop.f32.mrb[0].mxu0 }
 0x27b   : > { %v958_v17 = vpop.f32.mrb[1].mxu0  ;;  %v964_v47 = vadd.f32 %v1493_v56, %v1388_v27 }
 0x27c   : > { %v959_v16 = vadd.f32 %v1388_v27, %v958_v17 }
 0x27d   : > { %v1038_v21 = vmax.f32 %v964_v47, 0.0 }
 0x27e   : > { %v1037_v22 = vmax.f32 %v959_v16, 0.0  ;;  %v1074_v16 = vld [vmem:[#allocation2] sm:$0x1] }
 0x282   : > { %v1496_v19 = vpop.f32.mrb[2].mxu0 }
 0x283   : > { %v968_v15 = vpop.f32.mrb[3].mxu0  ;;  %v974_v50 = vadd.f32 %v1496_v19, %v1388_v27 }
 0x284   : > { %v969_v24 = vadd.f32 %v1388_v27, %v968_v15 }
 0x285   : > { %v1040_v49 = vmax.f32 %v974_v50, 0.0 }
 0x286   : > { %v1039_v57 = vmax.f32 %v969_v24, 0.0 }
 0x28a   : > { %v1499_v43 = vpop.f32.mrb[4].mxu0 }
 0x28b   : > { %v984_v18 = vadd.f32 %v1499_v43, %v1388_v27  ;;  %v978_v42 = vpop.f32.mrb[5].mxu0 }
 0x28c   : > { %v979_v20 = vadd.f32 %v1388_v27, %v978_v42 }
 0x28d   : > { %v1042_v37 = vmax.f32 %v984_v18, 0.0 }
 0x28e   : > { %v1041_v44 = vmax.f32 %v979_v20, 0.0  ;;  %v1185_v20 = vld [vmem:[%s2567_s7 + $0x78] sm:$0xff] }
 0x28f   : > { %v1054_v23 = vmax.f32 %v1038_v21, %v1042_v37  ;;  %v1097_v37 = vld [vmem:[%s2566_s6] sm:$0x1] }
 0x290   : > { %v1053_v51 = vmax.f32 %v1037_v22, %v1041_v44 }
 0x292   : > { %v1502_v25 = vpop.f32.mrb[6].mxu0 }
 0x293   : > { %v994_v28 = vadd.f32 %v1502_v25, %v1388_v27  ;;  %v988_v29 = vpop.f32.mrb[7].mxu0 }
 0x294   : > { %v989_v30 = vadd.f32 %v1388_v27, %v988_v29 }
 0x295   : > { %v1044_v31 = vmax.f32 %v994_v28, 0.0 }
 0x296   : > { %v1043_v35 = vmax.f32 %v989_v30, 0.0 }
 0x297   : > { %v1056_v46 = vmax.f32 %v1040_v49, %v1044_v31 }
 0x298   : > { %v1055_v45 = vmax.f32 %v1039_v57, %v1043_v35 }
 0x29a   : > { %v1505_v54 = vpop.f32.mrb[8].mxu0 }
 0x29b   : > { %v1004_v52 = vadd.f32 %v1505_v54, %v1388_v27  ;;  %v998_v55 = vpop.f32.mrb[9].mxu0 }
 0x29c   : > { %v999_v58 = vadd.f32 %v1388_v27, %v998_v55 }
 0x29d   : > { %v1046_v59 = vmax.f32 %v1004_v52, 0.0 }
 0x29e   : > { %v1045_v60 = vmax.f32 %v999_v58, 0.0 }
 0x29f   : > { %v1058_v14 = vmax.f32 %v1054_v23, %v1046_v59 }
 0x2a0   : > { %v1057_v61 = vmax.f32 %v1053_v51, %v1045_v60 }
 0x2a2   : > { %v1508_v62 = vpop.f32.mrb[10].mxu0 }
 0x2a3   : > { %v1014_v53 = vadd.f32 %v1508_v62, %v1388_v27  ;;  %v1008_v0 = vpop.f32.mrb[11].mxu0 }
 0x2a4   : > { %v1009_v1 = vadd.f32 %v1388_v27, %v1008_v0 }
 0x2a5   : > { %v1048_v34 = vmax.f32 %v1014_v53, 0.0 }
 0x2a6   : > { %v1047_v5 = vmax.f32 %v1009_v1, 0.0 }
 0x2a7   : > { %v1060_v2 = vmax.f32 %v1056_v46, %v1048_v34 }
 0x2a8   : > { %v1059_v63 = vmax.f32 %v1055_v45, %v1047_v5 }
 0x2aa   : > { %v1511_v33 = vpop.f32.mrb[12].mxu0 }
 0x2ab   : > { %v1024_v3 = vadd.f32 %v1511_v33, %v1388_v27  ;;  %v1018_v48 = vpop.f32.mrb[13].mxu0 }
 0x2ac   : > { %v1019_v32 = vadd.f32 %v1388_v27, %v1018_v48 }
 0x2ad   : > { %v1050_v26 = vmax.f32 %v1024_v3, 0.0 }
 0x2ae   : > { %v1049_v4 = vmax.f32 %v1019_v32, 0.0 }
 0x2af   : > { %v1062_v6 = vmax.f32 %v1058_v14, %v1050_v26 }
 0x2b0   : > { %v1061_v40 = vmax.f32 %v1057_v61, %v1049_v4 }
 0x2b2   : > { %v1065_v7 = vmax.f32 %v1061_v40, %v1062_v6  ;;  %v1514_v8 = vpop.f32.mrb[14].mxu0 }
 0x2b3   : > { %v1034_v9 = vadd.f32 %v1514_v8, %v1388_v27  ;;  %v1028_v36 = vpop.f32.mrb[15].mxu0 }
 0x2b4   : > { %v1029_v41 = vadd.f32 %v1388_v27, %v1028_v36  ;;  %v1184_v27 = vld [vmem:[%s2567_s7 + $0x70] sm:$0xff] }
 0x2b5   : > { %v1052_v38 = vmax.f32 %v1034_v9, 0.0  ;;  %v1663_v21 = vpack.c.bf16 %v1185_v20, %v1184_v27 }
 0x2b6   : > { %v1051_v10 = vmax.f32 %v1029_v41, 0.0 }
 0x2b7   : > { %v1064_v11 = vmax.f32 %v1060_v2, %v1052_v38  ;;  %1664 = vmatpush3.bf16.msra.mxu0 %v1663_v21 }
 0x2b8   : > { %v1063_v12 = vmax.f32 %v1059_v63, %v1051_v10 }
 0x2ba   : > { %v1066_v13 = vmax.f32 %v1063_v12, %v1064_v11 }
 0x2bc   : > { %v1067_v39 = vmax.f32 %v1065_v7, %v1066_v13 }
 0x2be   : > { %v1068_v56 = vrot.slane %v1067_v39, 4 }
 0x2c0   : > { %v1069_v17 = vmax.f32 %v1067_v39, %v1068_v56 }
 0x2c2   : > { %v1070_v19 = vrot.slane %v1069_v17, 2 }
 0x2c4   : > { %v1071_v15 = vmax.f32 %v1069_v17, %v1070_v19 }
 0x2c6   : > { %v1072_v47 = vrot.slane %v1071_v15, 1 }
 0x2c8   : > { %v1073_v43 = vmax.f32 %v1071_v15, %v1072_v47 }
 0x2ca   : > { %v1075_v18 = vmax.f32 %v1074_v16, %v1073_v43 }
 0x2cc   : > { %1076 = vst [vmem:[#allocation2] sm:$0x1] %v1075_v18 }
 0x2d3   : > { %v1080_v42 = vld [vmem:[#allocation2] sm:$0x1] }
 0x2d4   : > { %1548 = vmatmul.mubr.f32.vlgmr.msra.gmra.mrb[0].mxu1 %v1080_v42 }
 0x3a7   : > { %v1164_v22 = vpop.f32.mrb[0].mxu1 }
 0x3a8   : > { %v1165_v44 = vadd.f32 %v1164_v22, %v1097_v37  ;;  %v1549_v23 = vpop.f32.mrb[1].mxu1 }
 0x3aa   : > { %v1168_v51 = vmax.f32 %v1165_v44, 0.0 }
 0x3ac   : > { %1169 = vst [vmem:[%s379_s1] sm:$0x1] %v1168_v51  ;;  %1583 = vmatmul.mubr.f32.vlgmr.msra.gmra.mrb[16].mxu0 %v1168_v51 }
 0x3ad   : > { %1785 = shalt.err (!%p1782_p5)
}
 0x3ae   : > { %s1786_s1 = scalar_lea.hbm %s2483_s12, 16  ;;  %s1790_s24 = scalar_lea.hbm %s2570_s10, 256 }
 0x3af   : > { %p1787_p6 = scmp.ne.s32.totalorder %s2483_s12, %s1786_s1  ;;  %p1791_p10 = scmp.lt.u32.totalorder %s2483_s12, %s2570_s10 }
 0x3b0   : > { %p1792_p11 = scmp.lt.u32.totalorder %s1790_s24, %s1786_s1  ;;  %p1794_p13 = scmp.lt.u32.totalorder %s1786_s1, %s2483_s12 }
 0x3b1   : > { %p1788_p7 = pnand %p1787_p6, %p1988_p4 }
 0x3b2   : > { %p1793_p12 = por %p1792_p11, %p1791_p10 }
 0x3b3   : > { %p1789_p9 = pneg %p1788_p7 }
 0x3b4   : > { %p1795_p0 = por %p1794_p13, %p1793_p12 }
 0x3b6   : > { %p1796_p1 = pnand %p1795_p0, %p1789_p9 }
 0x3b8   : > { %1799 = shalt.err (!%p1796_p1)
}
 0x3b9   : > { %1666 = dma.vmem_to_hbm [thread:$0]  (%p1988_p4), %s1289_s19, 16, %s2483_s12, %s1263_s22   ;;  %v1186_v50 = vld [vmem:[%s2568_s8] sm:$0x1] }
 0x3ba   : > { %s373_s29 = scalar_lea.vmem [#allocation3], %s2474_s28  ;;  %s2578_s1 = sshll.u32 %s1874_s16, 4 }
 0x3bb   : > { %s1275_s30 = sshll.u32 %s373_s29, 4  ;;  %s2512_s27 = scalar_lea.hbm %s2569_s9, %s2578_s1  ;;  %s2514_s30 = int_to_ptr.vmem [resolvable:$true] %s1275_s30 }
 0x3bc   : > { %s1259_s12 = scalar_lea.sflag [#allocation4], %s2474_s28  ;;  %s1800_s19 = scalar_lea.vmem %s2514_s30, 16 }
 0x3bd   : > { %p1801_p2 = scmp.ne.s32.totalorder %s2514_s30, %s1800_s19  ;;  %s1892_s22 = smov [#allocation3]  }
 0x3be   : > { %s1804_s0 = sshll.u32 %s1892_s22, 4  ;;  %s1805_s0 = int_to_ptr.vmem [resolvable:$false] %s1804_s0 }
 0x3bf   : > { %p1802_p3 = pnand %p1801_p2, %p1988_p4  ;;  %s1806_s16 = scalar_lea.vmem %s1805_s0, 32 }
 0x3c0   : > { %p1807_p6 = scmp.lt.s32.totalorder %s2514_s30, %s1805_s0  ;;  %p1808_p7 = scmp.lt.s32.totalorder %s1806_s16, %s1800_s19 }
 0x3c1   : > { %p1803_p5 = pneg %p1802_p3 }
 0x3c2   : > { %p1809_p9 = por %p1808_p7, %p1807_p6 }
 0x3c4   : > { %p1810_p10 = pnand %p1809_p9, %p1803_p5 }
 0x47f   : > { %v1253_v24 = vpop.f32.mrb[16].mxu0 }
 0x480   : > { %v1254_v25 = vadd.f32 %v1253_v24, %v1186_v50  ;;  %v1584_v28 = vpop.f32.mrb[17].mxu0 }
 0x482   : > { %1257 = vst [vmem:[%s373_s29] sm:$0x1] %v1254_v25 }
 0x483   : > { %1813 = shalt.err (!%p1810_p10)
}
 0x484   : > { %s1814_s28 = scalar_lea.hbm %s2512_s27, 16  ;;  %s1818_s1 = scalar_lea.hbm %s2569_s9, 256 }
 0x485   : > { %p1815_p11 = scmp.ne.s32.totalorder %s2512_s27, %s1814_s28  ;;  %p1819_p0 = scmp.lt.u32.totalorder %s2512_s27, %s2569_s9 }
 0x486   : > { %p1820_p1 = scmp.lt.u32.totalorder %s1818_s1, %s1814_s28  ;;  %p1822_p3 = scmp.lt.u32.totalorder %s1814_s28, %s2512_s27 }
 0x487   : > { %p1816_p12 = pnand %p1815_p11, %p1988_p4 }
 0x488   : > { %p1821_p2 = por %p1820_p1, %p1819_p0 }
 0x489   : > { %p1817_p13 = pneg %p1816_p12 }
 0x48a   : > { %p1823_p5 = por %p1822_p3, %p1821_p2 }
 0x48c   : > { %p1824_p6 = pnand %p1823_p5, %p1817_p13 }
 0x48e   : > { %1827 = shalt.err (!%p1824_p6)
}
 0x48f   : > { %1665 = dma.vmem_to_hbm [thread:$0]  (%p1988_p4), %s2514_s30, 16, %s2512_s27, %s1259_s12  }
 0x490 PF: > { %p1676_p7 = scmp.ge.s32.totalorder %s1882_s18, 2  ;;  %s1300_s19 = sand.u32 1, %s1862_s13  }
 0x491   : > { %s1301_s22 = scalar_lea.sflag [#allocation4], %s1300_s19 }
 0x492   : > { %p1670_p9 = pnand %p1676_p7, %p1995_p8 }
 0x494   : > { %1853 = dma.done.wait (!%p1670_p9), %s1301_s22, 16  }
 0x495   : > { %1855 = vsyncadd (!%p1670_p9), %s1301_s22, 4294967280  ;;  %s1309_s0 = scalar_lea.sflag [#allocation6], %s1300_s19 }
 0x496   : > { %1857 = dma.done.wait (!%p1670_p9), %s1309_s0, 16  }
 0x497   : > { %1859 = vsyncadd (!%p1670_p9), %s1309_s0, 4294967280  ;;  %s27_s18 = sadd.s32 1, %s1882_s18   ;;  %s2579_s13 = smov %s1866_s14 }
 0x498   : > { %p24_p10 = scmp.ge.s32.totalorder %s27_s18, 18   ;;  %s2580_s14 = smov %s1870_s15 }
 0x499   : > { %s2581_s15 = smov %s2001_s26  ;;  %s2582_s16 = smov %s1878_s17 }
 0x49a   : > { %s2583_s17 = smov %s2585_s21  ;;  %26 = sbr.rel (!%p24_p10) target bundleno = 9 (0x9), region = 116 }
 0x4a1   :  { %1313 = vsyncpa [#allocation4], 1 }
 0x4a2   :  { %1315 = vsyncpa [#allocation4 + $0x1], 1 }
 0x4a3   :  { %1316 = vsyncpa [#allocation6], 1 }
 0x4a4   :  { %1318 = vsyncpa [#allocation6 + $0x1], 1 }

</bundles_post_ra>
